<compile_context>
chip_gen: v5e
topology: v5e:2x2
jax: 0.10.0
libtpu: 0.0.40
codegen_flags: <defaults>
</compile_context>

<pallas_src>
import math
import functools

import jax
import jax.numpy as jnp
from jax.experimental import pallas as pl
from jax.experimental.pallas import tpu as pltpu


# ----------------------------- config (small, synthetic) -----------------------------
class Cfg:
    lm_hidden_dim = 64
    lm_inter_dim = 128
    lm_n_heads = 4
    lm_n_kv_heads = 2
    lm_dropout = 0.0          # eval mode -> dropout is a no-op
    lm_rms_eps = 1e-5


# ----------------------------- Pallas kernel -----------------------------
def lm_block_kernel(
    x_ref, cos_ref, sin_ref,
    wqkv_ref, wo_ref, g1_ref, g2_ref, wgu_ref, wd_ref,
    o_ref,
    *, n_heads, n_kv_heads, head_dim, eps,
):
    f32, bf16 = jnp.float32, jnp.bfloat16
    x = x_ref[0]                                   # (T, C) f32 (one batch element)
    T, C = x.shape
    hd = head_dim
    hd2 = hd // 2
    groups = n_heads // n_kv_heads
    kvC = n_kv_heads * hd

    cos = cos_ref[...]                             # (T, hd) f32
    sin = sin_ref[...]

    def rmsnorm(h, w):
        ms = jnp.mean(h * h, axis=-1, keepdims=True)
        return h * jax.lax.rsqrt(ms + eps) * w     # w: (1, C), broadcasts

    def rot_half(t):                               # (T, hd): [q1,q2] -> [-q2,q1] (static lane slices)
        return jnp.concatenate([-t[:, hd2:], t[:, :hd2]], axis=-1)

    # causal mask generated in-kernel (no HBM bias operand); batch isolation via the batch grid
    row = jax.lax.broadcasted_iota(jnp.int32, (T, T), 0)
    col = jax.lax.broadcasted_iota(jnp.int32, (T, T), 1)
    neg_mask = jnp.where(col <= row, 0.0, -1e30).astype(f32)

    # ---- norm1 + fused lane-dense QKV projection ----
    xn = rmsnorm(x, g1_ref[...]).astype(bf16)                                  # (T, C) bf16
    qkv = jnp.dot(xn, wqkv_ref[...], preferred_element_type=f32)               # (T, C + 2*kvC) f32
    scale = 1.0 / math.sqrt(hd)

    # K/V are projected for n_kv heads only; RoPE on K once per kv head
    k_rot, v_heads = [], []
    for g in range(n_kv_heads):
        k_g = qkv[:, C + g * hd: C + (g + 1) * hd]                             # (T, hd) f32
        k_rot.append((k_g * cos + rot_half(k_g) * sin).astype(bf16))
        v_heads.append(qkv[:, C + kvC + g * hd: C + kvC + (g + 1) * hd].astype(bf16))

    # TODO(synk): at large n_heads / T switch this unrolled loop to a fori_loop / grid axis with a
    #             kv-tiled online-softmax so live ranges and the (T,T) scores stay bounded.
    y_heads = []
    for h in range(n_heads):
        g = h // groups                                                        # GQA kv-head sharing
        q_h = qkv[:, h * hd: (h + 1) * hd] * scale                             # f32, scale in f32
        q_h = (q_h * cos + rot_half(q_h) * sin).astype(bf16)                   # RoPE (VPU, no matmul)
        s = jax.lax.dot_general(                                               # (T, T) f32 scores
            q_h, k_rot[g], dimension_numbers=(((1,), (1,)), ((), ())),
            preferred_element_type=f32)
        s = s + neg_mask
        s = s - jnp.max(s, axis=-1, keepdims=True)
        p = jnp.exp(s)
        inv_l = pl.reciprocal(jnp.sum(p, axis=-1, keepdims=True), approx=True)
        y_h = jnp.dot(p.astype(bf16), v_heads[g], preferred_element_type=f32)  # (T, hd) f32
        y_heads.append((y_h * inv_l).astype(bf16))

    # head concat -> single fused output projection (K = C contraction, no (H,M,C) intermediate)
    y_cat = jnp.concatenate(y_heads, axis=-1)                                  # (T, C) bf16
    attn = jnp.dot(y_cat, wo_ref[...], preferred_element_type=f32)             # (T, C) f32

    x2 = x + attn                                                              # residual 1

    # ---- norm2 + SwiGLU MLP (gate & up fused into one lane-dense matmul) ----
    xn2 = rmsnorm(x2, g2_ref[...]).astype(bf16)
    gu = jnp.dot(xn2, wgu_ref[...], preferred_element_type=f32)                # (T, 2I) f32
    inter = gu.shape[-1] // 2
    gate = gu[:, :inter]
    up = gu[:, inter:]
    gate = gate * jax.nn.sigmoid(gate)                                         # SiLU in f32
    mlp = jnp.dot((gate * up).astype(bf16), wd_ref[...], preferred_element_type=f32)

    o_ref[0] = x2 + mlp                                                        # residual 2


# ----------------------------- wrapper -----------------------------
def lm_block_pallas(x, cos, sin, params, cfg):
    B, T, C = x.shape
    nh, nkv = cfg.lm_n_heads, cfg.lm_n_kv_heads
    hd = C // nh
    kvC = nkv * hd
    I = cfg.lm_inter_dim
    bf16 = jnp.bfloat16

    # host-side: only dtype casts and column concatenation (no scale/rotation/replication folding)
    wqkv = jnp.concatenate([params["wq"], params["wk"], params["wv"]], axis=1).astype(bf16)  # (C, C+2kvC)
    wo = params["wo"].astype(bf16)                                                           # (C, C)
    wgu = jnp.concatenate([params["wgate"], params["wup"]], axis=1).astype(bf16)             # (C, 2I)
    wd = params["wdown"].astype(bf16)                                                        # (I, C)
    g1 = params["g1"].astype(jnp.float32)                                                    # (1, C)
    g2 = params["g2"].astype(jnp.float32)
    cos_f = cos.astype(jnp.float32)                                                          # (T, hd)
    sin_f = sin.astype(jnp.float32)
    x_f = x.astype(jnp.float32)

    kernel = functools.partial(lm_block_kernel, n_heads=nh, n_kv_heads=nkv,
                               head_dim=hd, eps=cfg.lm_rms_eps)

    def const_spec(arr):
        nd = arr.ndim
        return pl.BlockSpec(arr.shape, lambda b, _nd=nd: (0,) * _nd)

    in_specs = [
        pl.BlockSpec((1, T, C), lambda b: (b, 0, 0)),   # x: one batch element per grid step
        const_spec(cos_f), const_spec(sin_f),
        const_spec(wqkv), const_spec(wo),
        const_spec(g1), const_spec(g2),
        const_spec(wgu), const_spec(wd),
    ]
    out_specs = pl.BlockSpec((1, T, C), lambda b: (b, 0, 0))

    flops = B * (
        2 * T * C * (C + 2 * kvC)      # fused qkv projection
        + 4 * nh * T * T * hd          # scores + PV
        + 2 * T * C * C                # output projection
        + 2 * T * C * 2 * I            # gate + up
        + 2 * T * I * C                # down
    )
    transcendentals = B * (nh * T * T + T * I)
    operands = (x_f, cos_f, sin_f, wqkv, wo, g1, g2, wgu, wd)
    bytes_accessed = sum(int(a.size) * a.dtype.itemsize for a in operands) + B * T * C * 4

    out = pl.pallas_call(
        kernel,
        grid=(B,),
        in_specs=in_specs,
        out_specs=out_specs,
        out_shape=jax.ShapeDtypeStruct((B, T, C), jnp.float32),
        compiler_params=pltpu.CompilerParams(dimension_semantics=("parallel",)),
        cost_estimate=pl.CostEstimate(flops=int(flops),
                                      transcendentals=int(transcendentals),
                                      bytes_accessed=int(bytes_accessed)),
    )(*operands)
    return out


# ----------------------------- pure-JAX reference (matches the PyTorch module, f32) -----------------------------
def lm_block_ref(x, cos, sin, p, cfg):
    B, T, C = x.shape
    nh, nkv = cfg.lm_n_heads, cfg.lm_n_kv_heads
    hd = C // nh
    eps = cfg.lm_rms_eps

    def rmsnorm(h, w):
        return h * jax.lax.rsqrt(jnp.mean(h * h, axis=-1, keepdims=True) + eps) * w

    def rot_half(t):
        t1, t2 = jnp.split(t, 2, axis=-1)
        return jnp.concatenate([-t2, t1], axis=-1)

    res = x
    xn = rmsnorm(x, p["g1"][0])
    q = (xn @ p["wq"]).reshape(B, T, nh, hd).transpose(0, 2, 1, 3)
    k = (xn @ p["wk"]).reshape(B, T, nkv, hd).transpose(0, 2, 1, 3)
    v = (xn @ p["wv"]).reshape(B, T, nkv, hd).transpose(0, 2, 1, 3)
    c = cos[None, None]; s = sin[None, None]
    q = q * c + rot_half(q) * s
    k = k * c + rot_half(k) * s
    k = jnp.repeat(k, nh // nkv, axis=1)
    v = jnp.repeat(v, nh // nkv, axis=1)
    att = jnp.einsum("bhqd,bhkd->bhqk", q, k) / math.sqrt(hd)
    causal = jnp.tril(jnp.ones((T, T), bool))
    att = jnp.where(causal[None, None], att, -jnp.inf)
    att = jax.nn.softmax(att, axis=-1)
    y = jnp.einsum("bhqk,bhkd->bhqd", att, v)
    y = y.transpose(0, 2, 1, 3).reshape(B, T, C)
    x = res + y @ p["wo"]
    res = x
    xn2 = rmsnorm(x, p["g2"][0])
    gate = jax.nn.silu(xn2 @ p["wgate"])
    up = xn2 @ p["wup"]
    return res + (gate * up) @ p["wdown"]


# ----------------------------- main -----------------------------
if __name__ == "__main__":
    cfg = Cfg()
    B, T = 2, 8
    C, I = cfg.lm_hidden_dim, cfg.lm_inter_dim
    hd = C // cfg.lm_n_heads
    kvC = hd * cfg.lm_n_kv_heads

    key = jax.random.PRNGKey(0)
    ks = jax.random.split(key, 10)
    init = lambda k, shp: (0.02 * jax.random.normal(k, shp)).astype(jnp.float32)

    # Linear weights stored as [in, out] (== PyTorch weight.T)
    params = {
        "wq": init(ks[0], (C, C)),
        "wk": init(ks[1], (C, kvC)),
        "wv": init(ks[2], (C, kvC)),
        "wo": init(ks[3], (C, C)),
        "g1": jnp.ones((1, C), jnp.float32),
        "g2": jnp.ones((1, C), jnp.float32),
        "wgate": init(ks[4], (C, I)),
        "wup": init(ks[5], (C, I)),
        "wdown": init(ks[6], (I, C)),
    }

    x = jax.random.normal(ks[7], (B, T, C), jnp.float32)

    # rotary tables (standard RoPE)
    inv_freq = 1.0 / (10000.0 ** (jnp.arange(0, hd, 2, dtype=jnp.float32) / hd))
    pos = jnp.arange(T, dtype=jnp.float32)
    freqs = jnp.outer(pos, inv_freq)                 # (T, hd/2)
    emb = jnp.concatenate([freqs, freqs], axis=-1)   # (T, hd)
    cos, sin = jnp.cos(emb), jnp.sin(emb)

    out = lm_block_pallas(x, cos, sin, params, cfg)
    out = jax.block_until_ready(out)

    ref = lm_block_ref(x, cos, sin, params, cfg)
    assert out.shape == (B, T, C)
    # tolerance accounts for bf16 MXU inputs (f32 accumulation) + approx EUP reciprocal in softmax
    assert jnp.allclose(out, ref, atol=1e-2, rtol=1e-2), float(jnp.max(jnp.abs(out - ref)))

    print("KERNEL_OK")
</pallas_src>

<mosaic_0001>
module attributes {stable_mosaic.version = 11 : i64} {
  func.func @lm_block_kernel(%arg0: i32, %arg1: memref<1x8x64xf32, #tpu.memory_space<vmem>>, %arg2: memref<8x16xf32, #tpu.memory_space<vmem>>, %arg3: memref<8x16xf32, #tpu.memory_space<vmem>>, %arg4: memref<64x128xbf16, #tpu.memory_space<vmem>>, %arg5: memref<64x64xbf16, #tpu.memory_space<vmem>>, %arg6: memref<1x64xf32, #tpu.memory_space<vmem>>, %arg7: memref<1x64xf32, #tpu.memory_space<vmem>>, %arg8: memref<64x256xbf16, #tpu.memory_space<vmem>>, %arg9: memref<128x64xbf16, #tpu.memory_space<vmem>>, %arg10: memref<1x8x64xf32, #tpu.memory_space<vmem>>) attributes {dimension_semantics = [#tpu.dimension_semantics<parallel>], iteration_bounds = array<i64: 2>, scalar_prefetch = 0 : i64, scratch_operands = 0 : i64, tpu.core_type = #tpu.core_type<tc>, window_params = [{transform_indices = @transform_0, window_bounds = array<i64: 1, 8, 64>}, {pipeline_mode = #tpu.pipeline_mode<synchronous>, transform_indices = @transform_1, window_bounds = array<i64: 8, 16>}, {pipeline_mode = #tpu.pipeline_mode<synchronous>, transform_indices = @transform_2, window_bounds = array<i64: 8, 16>}, {pipeline_mode = #tpu.pipeline_mode<synchronous>, transform_indices = @transform_3, window_bounds = array<i64: 64, 128>}, {pipeline_mode = #tpu.pipeline_mode<synchronous>, transform_indices = @transform_4, window_bounds = array<i64: 64, 64>}, {pipeline_mode = #tpu.pipeline_mode<synchronous>, transform_indices = @transform_5, window_bounds = array<i64: 1, 64>}, {pipeline_mode = #tpu.pipeline_mode<synchronous>, transform_indices = @transform_6, window_bounds = array<i64: 1, 64>}, {pipeline_mode = #tpu.pipeline_mode<synchronous>, transform_indices = @transform_7, window_bounds = array<i64: 64, 256>}, {pipeline_mode = #tpu.pipeline_mode<synchronous>, transform_indices = @transform_8, window_bounds = array<i64: 128, 64>}, {transform_indices = @transform_9, window_bounds = array<i64: 1, 8, 64>}]} {
    %c0 = arith.constant 0 : index
    %c0_0 = arith.constant 0 : index
    %c0_1 = arith.constant 0 : index
    %0 = vector.load %arg1[%c0, %c0_0, %c0_1] : memref<1x8x64xf32, #tpu.memory_space<vmem>>, vector<1x8x64xf32>
    %1 = vector.shape_cast %0 : vector<1x8x64xf32> to vector<8x64xf32>
    %c0_2 = arith.constant 0 : index
    %c0_3 = arith.constant 0 : index
    %2 = vector.load %arg2[%c0_2, %c0_3] : memref<8x16xf32, #tpu.memory_space<vmem>>, vector<8x16xf32>
    %c0_4 = arith.constant 0 : index
    %c0_5 = arith.constant 0 : index
    %3 = vector.load %arg3[%c0_4, %c0_5] : memref<8x16xf32, #tpu.memory_space<vmem>>, vector<8x16xf32>
    %4 = tpu.iota {dimensions = array<i32: 0>} : vector<8x8xi32>
    %5 = tpu.iota {dimensions = array<i32: 1>} : vector<8x8xi32>
    %6 = arith.cmpi sle, %5, %4 : vector<8x8xi32>
    %cst = arith.constant 0.000000e+00 : f32
    %cst_6 = arith.constant -1.000000e+30 : f32
    %7 = vector.broadcast %cst : f32 to vector<8x8xf32>
    %8 = vector.broadcast %cst_6 : f32 to vector<8x8xf32>
    %9 = arith.select %6, %7, %8 : vector<8x8xi1>, vector<8x8xf32>
    %c0_7 = arith.constant 0 : index
    %c0_8 = arith.constant 0 : index
    %10 = vector.load %arg6[%c0_7, %c0_8] : memref<1x64xf32, #tpu.memory_space<vmem>>, vector<1x64xf32>
    %11 = arith.mulf %1, %1 : vector<8x64xf32>
    %cst_9 = arith.constant dense<0.000000e+00> : vector<8xf32>
    %12 = vector.multi_reduction <add>, %11, %cst_9 [1] : vector<8x64xf32> to vector<8xf32>
    %13 = vector.shape_cast %12 : vector<8xf32> to vector<8x1xf32>
    %cst_10 = arith.constant 6.400000e+01 : f32
    %14 = vector.broadcast %cst_10 : f32 to vector<8x1xf32>
    %15 = arith.divf %13, %14 : vector<8x1xf32>
    %cst_11 = arith.constant 9.99999974E-6 : f32
    %16 = vector.broadcast %cst_11 : f32 to vector<8x1xf32>
    %17 = arith.addf %15, %16 : vector<8x1xf32>
    %18 = math.rsqrt %17 : vector<8x1xf32>
    %19 = vector.broadcast %18 : vector<8x1xf32> to vector<8x64xf32>
    %20 = arith.mulf %1, %19 : vector<8x64xf32>
    %21 = vector.broadcast %10 : vector<1x64xf32> to vector<8x64xf32>
    %22 = arith.mulf %20, %21 : vector<8x64xf32>
    %23 = arith.truncf %22 : vector<8x64xf32> to vector<8x64xbf16>
    %c0_12 = arith.constant 0 : index
    %c0_13 = arith.constant 0 : index
    %24 = vector.load %arg4[%c0_12, %c0_13] : memref<64x128xbf16, #tpu.memory_space<vmem>>, vector<64x128xbf16>
    %cst_14 = arith.constant dense<0.000000e+00> : vector<8x128xf32>
    %25 = tpu.matmul %23, %24, %cst_14 {dimension_numbers = #tpu.dot_dimension_numbers<[1], [0], [0], [1], [0, 0, 1, 1], [], []>} : vector<8x64xbf16>, vector<64x128xbf16>, vector<8x128xf32> -> vector<8x128xf32>
    %26 = vector.extract_strided_slice %25 {offsets = [0, 64], sizes = [8, 16], strides = [1, 1]} : vector<8x128xf32> to vector<8x16xf32>
    %27 = arith.mulf %26, %2 : vector<8x16xf32>
    %28 = vector.extract_strided_slice %26 {offsets = [0, 8], sizes = [8, 8], strides = [1, 1]} : vector<8x16xf32> to vector<8x8xf32>
    %cst_15 = arith.constant 0.000000e+00 : f32
    %29 = vector.broadcast %cst_15 : f32 to vector<8x8xf32>
    %30 = arith.subf %29, %28 : vector<8x8xf32>
    %31 = vector.extract_strided_slice %26 {offsets = [0, 0], sizes = [8, 8], strides = [1, 1]} : vector<8x16xf32> to vector<8x8xf32>
    %32 = tpu.concatenate %30, %31 in 1 : vector<8x8xf32>, vector<8x8xf32> -> vector<8x16xf32>
    %33 = arith.mulf %32, %3 : vector<8x16xf32>
    %34 = arith.addf %27, %33 : vector<8x16xf32>
    %35 = arith.truncf %34 : vector<8x16xf32> to vector<8x16xbf16>
    %36 = vector.extract_strided_slice %25 {offsets = [0, 96], sizes = [8, 16], strides = [1, 1]} : vector<8x128xf32> to vector<8x16xf32>
    %37 = arith.truncf %36 : vector<8x16xf32> to vector<8x16xbf16>
    %38 = vector.extract_strided_slice %25 {offsets = [0, 80], sizes = [8, 16], strides = [1, 1]} : vector<8x128xf32> to vector<8x16xf32>
    %39 = arith.mulf %38, %2 : vector<8x16xf32>
    %40 = vector.extract_strided_slice %38 {offsets = [0, 8], sizes = [8, 8], strides = [1, 1]} : vector<8x16xf32> to vector<8x8xf32>
    %cst_16 = arith.constant 0.000000e+00 : f32
    %41 = vector.broadcast %cst_16 : f32 to vector<8x8xf32>
    %42 = arith.subf %41, %40 : vector<8x8xf32>
    %43 = vector.extract_strided_slice %38 {offsets = [0, 0], sizes = [8, 8], strides = [1, 1]} : vector<8x16xf32> to vector<8x8xf32>
    %44 = tpu.concatenate %42, %43 in 1 : vector<8x8xf32>, vector<8x8xf32> -> vector<8x16xf32>
    %45 = arith.mulf %44, %3 : vector<8x16xf32>
    %46 = arith.addf %39, %45 : vector<8x16xf32>
    %47 = arith.truncf %46 : vector<8x16xf32> to vector<8x16xbf16>
    %48 = vector.extract_strided_slice %25 {offsets = [0, 112], sizes = [8, 16], strides = [1, 1]} : vector<8x128xf32> to vector<8x16xf32>
    %49 = arith.truncf %48 : vector<8x16xf32> to vector<8x16xbf16>
    %50 = vector.extract_strided_slice %25 {offsets = [0, 0], sizes = [8, 16], strides = [1, 1]} : vector<8x128xf32> to vector<8x16xf32>
    %cst_17 = arith.constant 2.500000e-01 : f32
    %51 = vector.broadcast %cst_17 : f32 to vector<8x16xf32>
    %52 = arith.mulf %50, %51 : vector<8x16xf32>
    %53 = arith.mulf %52, %2 : vector<8x16xf32>
    %54 = vector.extract_strided_slice %52 {offsets = [0, 8], sizes = [8, 8], strides = [1, 1]} : vector<8x16xf32> to vector<8x8xf32>
    %cst_18 = arith.constant 0.000000e+00 : f32
    %55 = vector.broadcast %cst_18 : f32 to vector<8x8xf32>
    %56 = arith.subf %55, %54 : vector<8x8xf32>
    %57 = vector.extract_strided_slice %52 {offsets = [0, 0], sizes = [8, 8], strides = [1, 1]} : vector<8x16xf32> to vector<8x8xf32>
    %58 = tpu.concatenate %56, %57 in 1 : vector<8x8xf32>, vector<8x8xf32> -> vector<8x16xf32>
    %59 = arith.mulf %58, %3 : vector<8x16xf32>
    %60 = arith.addf %53, %59 : vector<8x16xf32>
    %61 = arith.truncf %60 : vector<8x16xf32> to vector<8x16xbf16>
    %cst_19 = arith.constant dense<0.000000e+00> : vector<8x8xf32>
    %62 = tpu.matmul %61, %35, %cst_19 {dimension_numbers = #tpu.dot_dimension_numbers<[1], [1], [0], [0], [0, 0, 1, 0], [], []>} : vector<8x16xbf16>, vector<8x16xbf16>, vector<8x8xf32> -> vector<8x8xf32>
    %63 = arith.addf %62, %9 : vector<8x8xf32>
    %cst_20 = arith.constant dense<0xFF800000> : vector<8xf32>
    %64 = vector.multi_reduction <maximumf>, %63, %cst_20 [1] : vector<8x8xf32> to vector<8xf32>
    %65 = vector.shape_cast %64 : vector<8xf32> to vector<8x1xf32>
    %66 = vector.broadcast %65 : vector<8x1xf32> to vector<8x8xf32>
    %67 = arith.subf %63, %66 : vector<8x8xf32>
    %68 = math.exp %67 : vector<8x8xf32>
    %cst_21 = arith.constant dense<0.000000e+00> : vector<8xf32>
    %69 = vector.multi_reduction <add>, %68, %cst_21 [1] : vector<8x8xf32> to vector<8xf32>
    %70 = vector.shape_cast %69 : vector<8xf32> to vector<8x1xf32>
    %71 = tpu.reciprocal %70 {approx = true} : vector<8x1xf32> -> vector<8x1xf32>
    %72 = arith.truncf %68 : vector<8x8xf32> to vector<8x8xbf16>
    %cst_22 = arith.constant dense<0.000000e+00> : vector<8x16xf32>
    %73 = tpu.matmul %72, %37, %cst_22 {dimension_numbers = #tpu.dot_dimension_numbers<[1], [0], [0], [1], [0, 0, 1, 1], [], []>} : vector<8x8xbf16>, vector<8x16xbf16>, vector<8x16xf32> -> vector<8x16xf32>
    %74 = vector.broadcast %71 : vector<8x1xf32> to vector<8x16xf32>
    %75 = arith.mulf %73, %74 : vector<8x16xf32>
    %76 = arith.truncf %75 : vector<8x16xf32> to vector<8x16xbf16>
    %77 = vector.extract_strided_slice %25 {offsets = [0, 16], sizes = [8, 16], strides = [1, 1]} : vector<8x128xf32> to vector<8x16xf32>
    %cst_23 = arith.constant 2.500000e-01 : f32
    %78 = vector.broadcast %cst_23 : f32 to vector<8x16xf32>
    %79 = arith.mulf %77, %78 : vector<8x16xf32>
    %80 = arith.mulf %79, %2 : vector<8x16xf32>
    %81 = vector.extract_strided_slice %79 {offsets = [0, 8], sizes = [8, 8], strides = [1, 1]} : vector<8x16xf32> to vector<8x8xf32>
    %cst_24 = arith.constant 0.000000e+00 : f32
    %82 = vector.broadcast %cst_24 : f32 to vector<8x8xf32>
    %83 = arith.subf %82, %81 : vector<8x8xf32>
    %84 = vector.extract_strided_slice %79 {offsets = [0, 0], sizes = [8, 8], strides = [1, 1]} : vector<8x16xf32> to vector<8x8xf32>
    %85 = tpu.concatenate %83, %84 in 1 : vector<8x8xf32>, vector<8x8xf32> -> vector<8x16xf32>
    %86 = arith.mulf %85, %3 : vector<8x16xf32>
    %87 = arith.addf %80, %86 : vector<8x16xf32>
    %88 = arith.truncf %87 : vector<8x16xf32> to vector<8x16xbf16>
    %cst_25 = arith.constant dense<0.000000e+00> : vector<8x8xf32>
    %89 = tpu.matmul %88, %35, %cst_25 {dimension_numbers = #tpu.dot_dimension_numbers<[1], [1], [0], [0], [0, 0, 1, 0], [], []>} : vector<8x16xbf16>, vector<8x16xbf16>, vector<8x8xf32> -> vector<8x8xf32>
    %90 = arith.addf %89, %9 : vector<8x8xf32>
    %cst_26 = arith.constant dense<0xFF800000> : vector<8xf32>
    %91 = vector.multi_reduction <maximumf>, %90, %cst_26 [1] : vector<8x8xf32> to vector<8xf32>
    %92 = vector.shape_cast %91 : vector<8xf32> to vector<8x1xf32>
    %93 = vector.broadcast %92 : vector<8x1xf32> to vector<8x8xf32>
    %94 = arith.subf %90, %93 : vector<8x8xf32>
    %95 = math.exp %94 : vector<8x8xf32>
    %cst_27 = arith.constant dense<0.000000e+00> : vector<8xf32>
    %96 = vector.multi_reduction <add>, %95, %cst_27 [1] : vector<8x8xf32> to vector<8xf32>
    %97 = vector.shape_cast %96 : vector<8xf32> to vector<8x1xf32>
    %98 = tpu.reciprocal %97 {approx = true} : vector<8x1xf32> -> vector<8x1xf32>
    %99 = arith.truncf %95 : vector<8x8xf32> to vector<8x8xbf16>
    %cst_28 = arith.constant dense<0.000000e+00> : vector<8x16xf32>
    %100 = tpu.matmul %99, %37, %cst_28 {dimension_numbers = #tpu.dot_dimension_numbers<[1], [0], [0], [1], [0, 0, 1, 1], [], []>} : vector<8x8xbf16>, vector<8x16xbf16>, vector<8x16xf32> -> vector<8x16xf32>
    %101 = vector.broadcast %98 : vector<8x1xf32> to vector<8x16xf32>
    %102 = arith.mulf %100, %101 : vector<8x16xf32>
    %103 = arith.truncf %102 : vector<8x16xf32> to vector<8x16xbf16>
    %104 = vector.extract_strided_slice %25 {offsets = [0, 32], sizes = [8, 16], strides = [1, 1]} : vector<8x128xf32> to vector<8x16xf32>
    %cst_29 = arith.constant 2.500000e-01 : f32
    %105 = vector.broadcast %cst_29 : f32 to vector<8x16xf32>
    %106 = arith.mulf %104, %105 : vector<8x16xf32>
    %107 = arith.mulf %106, %2 : vector<8x16xf32>
    %108 = vector.extract_strided_slice %106 {offsets = [0, 8], sizes = [8, 8], strides = [1, 1]} : vector<8x16xf32> to vector<8x8xf32>
    %cst_30 = arith.constant 0.000000e+00 : f32
    %109 = vector.broadcast %cst_30 : f32 to vector<8x8xf32>
    %110 = arith.subf %109, %108 : vector<8x8xf32>
    %111 = vector.extract_strided_slice %106 {offsets = [0, 0], sizes = [8, 8], strides = [1, 1]} : vector<8x16xf32> to vector<8x8xf32>
    %112 = tpu.concatenate %110, %111 in 1 : vector<8x8xf32>, vector<8x8xf32> -> vector<8x16xf32>
    %113 = arith.mulf %112, %3 : vector<8x16xf32>
    %114 = arith.addf %107, %113 : vector<8x16xf32>
    %115 = arith.truncf %114 : vector<8x16xf32> to vector<8x16xbf16>
    %cst_31 = arith.constant dense<0.000000e+00> : vector<8x8xf32>
    %116 = tpu.matmul %115, %47, %cst_31 {dimension_numbers = #tpu.dot_dimension_numbers<[1], [1], [0], [0], [0, 0, 1, 0], [], []>} : vector<8x16xbf16>, vector<8x16xbf16>, vector<8x8xf32> -> vector<8x8xf32>
    %117 = arith.addf %116, %9 : vector<8x8xf32>
    %cst_32 = arith.constant dense<0xFF800000> : vector<8xf32>
    %118 = vector.multi_reduction <maximumf>, %117, %cst_32 [1] : vector<8x8xf32> to vector<8xf32>
    %119 = vector.shape_cast %118 : vector<8xf32> to vector<8x1xf32>
    %120 = vector.broadcast %119 : vector<8x1xf32> to vector<8x8xf32>
    %121 = arith.subf %117, %120 : vector<8x8xf32>
    %122 = math.exp %121 : vector<8x8xf32>
    %cst_33 = arith.constant dense<0.000000e+00> : vector<8xf32>
    %123 = vector.multi_reduction <add>, %122, %cst_33 [1] : vector<8x8xf32> to vector<8xf32>
    %124 = vector.shape_cast %123 : vector<8xf32> to vector<8x1xf32>
    %125 = tpu.reciprocal %124 {approx = true} : vector<8x1xf32> -> vector<8x1xf32>
    %126 = arith.truncf %122 : vector<8x8xf32> to vector<8x8xbf16>
    %cst_34 = arith.constant dense<0.000000e+00> : vector<8x16xf32>
    %127 = tpu.matmul %126, %49, %cst_34 {dimension_numbers = #tpu.dot_dimension_numbers<[1], [0], [0], [1], [0, 0, 1, 1], [], []>} : vector<8x8xbf16>, vector<8x16xbf16>, vector<8x16xf32> -> vector<8x16xf32>
    %128 = vector.broadcast %125 : vector<8x1xf32> to vector<8x16xf32>
    %129 = arith.mulf %127, %128 : vector<8x16xf32>
    %130 = arith.truncf %129 : vector<8x16xf32> to vector<8x16xbf16>
    %131 = vector.extract_strided_slice %25 {offsets = [0, 48], sizes = [8, 16], strides = [1, 1]} : vector<8x128xf32> to vector<8x16xf32>
    %cst_35 = arith.constant 2.500000e-01 : f32
    %132 = vector.broadcast %cst_35 : f32 to vector<8x16xf32>
    %133 = arith.mulf %131, %132 : vector<8x16xf32>
    %134 = arith.mulf %133, %2 : vector<8x16xf32>
    %135 = vector.extract_strided_slice %133 {offsets = [0, 8], sizes = [8, 8], strides = [1, 1]} : vector<8x16xf32> to vector<8x8xf32>
    %cst_36 = arith.constant 0.000000e+00 : f32
    %136 = vector.broadcast %cst_36 : f32 to vector<8x8xf32>
    %137 = arith.subf %136, %135 : vector<8x8xf32>
    %138 = vector.extract_strided_slice %133 {offsets = [0, 0], sizes = [8, 8], strides = [1, 1]} : vector<8x16xf32> to vector<8x8xf32>
    %139 = tpu.concatenate %137, %138 in 1 : vector<8x8xf32>, vector<8x8xf32> -> vector<8x16xf32>
    %140 = arith.mulf %139, %3 : vector<8x16xf32>
    %141 = arith.addf %134, %140 : vector<8x16xf32>
    %142 = arith.truncf %141 : vector<8x16xf32> to vector<8x16xbf16>
    %cst_37 = arith.constant dense<0.000000e+00> : vector<8x8xf32>
    %143 = tpu.matmul %142, %47, %cst_37 {dimension_numbers = #tpu.dot_dimension_numbers<[1], [1], [0], [0], [0, 0, 1, 0], [], []>} : vector<8x16xbf16>, vector<8x16xbf16>, vector<8x8xf32> -> vector<8x8xf32>
    %144 = arith.addf %143, %9 : vector<8x8xf32>
    %cst_38 = arith.constant dense<0xFF800000> : vector<8xf32>
    %145 = vector.multi_reduction <maximumf>, %144, %cst_38 [1] : vector<8x8xf32> to vector<8xf32>
    %146 = vector.shape_cast %145 : vector<8xf32> to vector<8x1xf32>
    %147 = vector.broadcast %146 : vector<8x1xf32> to vector<8x8xf32>
    %148 = arith.subf %144, %147 : vector<8x8xf32>
    %149 = math.exp %148 : vector<8x8xf32>
    %cst_39 = arith.constant dense<0.000000e+00> : vector<8xf32>
    %150 = vector.multi_reduction <add>, %149, %cst_39 [1] : vector<8x8xf32> to vector<8xf32>
    %151 = vector.shape_cast %150 : vector<8xf32> to vector<8x1xf32>
    %152 = tpu.reciprocal %151 {approx = true} : vector<8x1xf32> -> vector<8x1xf32>
    %153 = arith.truncf %149 : vector<8x8xf32> to vector<8x8xbf16>
    %cst_40 = arith.constant dense<0.000000e+00> : vector<8x16xf32>
    %154 = tpu.matmul %153, %49, %cst_40 {dimension_numbers = #tpu.dot_dimension_numbers<[1], [0], [0], [1], [0, 0, 1, 1], [], []>} : vector<8x8xbf16>, vector<8x16xbf16>, vector<8x16xf32> -> vector<8x16xf32>
    %155 = vector.broadcast %152 : vector<8x1xf32> to vector<8x16xf32>
    %156 = arith.mulf %154, %155 : vector<8x16xf32>
    %157 = arith.truncf %156 : vector<8x16xf32> to vector<8x16xbf16>
    %158 = tpu.concatenate %76, %103, %130, %157 in 1 : vector<8x16xbf16>, vector<8x16xbf16>, vector<8x16xbf16>, vector<8x16xbf16> -> vector<8x64xbf16>
    %c0_41 = arith.constant 0 : index
    %c0_42 = arith.constant 0 : index
    %159 = vector.load %arg5[%c0_41, %c0_42] : memref<64x64xbf16, #tpu.memory_space<vmem>>, vector<64x64xbf16>
    %cst_43 = arith.constant dense<0.000000e+00> : vector<8x64xf32>
    %160 = tpu.matmul %158, %159, %cst_43 {dimension_numbers = #tpu.dot_dimension_numbers<[1], [0], [0], [1], [0, 0, 1, 1], [], []>} : vector<8x64xbf16>, vector<64x64xbf16>, vector<8x64xf32> -> vector<8x64xf32>
    %161 = arith.addf %1, %160 : vector<8x64xf32>
    %c0_44 = arith.constant 0 : index
    %c0_45 = arith.constant 0 : index
    %162 = vector.load %arg7[%c0_44, %c0_45] : memref<1x64xf32, #tpu.memory_space<vmem>>, vector<1x64xf32>
    %163 = arith.mulf %161, %161 : vector<8x64xf32>
    %cst_46 = arith.constant dense<0.000000e+00> : vector<8xf32>
    %164 = vector.multi_reduction <add>, %163, %cst_46 [1] : vector<8x64xf32> to vector<8xf32>
    %165 = vector.shape_cast %164 : vector<8xf32> to vector<8x1xf32>
    %cst_47 = arith.constant 6.400000e+01 : f32
    %166 = vector.broadcast %cst_47 : f32 to vector<8x1xf32>
    %167 = arith.divf %165, %166 : vector<8x1xf32>
    %cst_48 = arith.constant 9.99999974E-6 : f32
    %168 = vector.broadcast %cst_48 : f32 to vector<8x1xf32>
    %169 = arith.addf %167, %168 : vector<8x1xf32>
    %170 = math.rsqrt %169 : vector<8x1xf32>
    %171 = vector.broadcast %170 : vector<8x1xf32> to vector<8x64xf32>
    %172 = arith.mulf %161, %171 : vector<8x64xf32>
    %173 = vector.broadcast %162 : vector<1x64xf32> to vector<8x64xf32>
    %174 = arith.mulf %172, %173 : vector<8x64xf32>
    %175 = arith.truncf %174 : vector<8x64xf32> to vector<8x64xbf16>
    %c0_49 = arith.constant 0 : index
    %c0_50 = arith.constant 0 : index
    %176 = vector.load %arg8[%c0_49, %c0_50] : memref<64x256xbf16, #tpu.memory_space<vmem>>, vector<64x256xbf16>
    %cst_51 = arith.constant dense<0.000000e+00> : vector<8x256xf32>
    %177 = tpu.matmul %175, %176, %cst_51 {dimension_numbers = #tpu.dot_dimension_numbers<[1], [0], [0], [1], [0, 0, 1, 1], [], []>} : vector<8x64xbf16>, vector<64x256xbf16>, vector<8x256xf32> -> vector<8x256xf32>
    %178 = vector.extract_strided_slice %177 {offsets = [0, 0], sizes = [8, 128], strides = [1, 1]} : vector<8x256xf32> to vector<8x128xf32>
    %179 = vector.extract_strided_slice %177 {offsets = [0, 128], sizes = [8, 128], strides = [1, 1]} : vector<8x256xf32> to vector<8x128xf32>
    %180 = arith.negf %178 : vector<8x128xf32>
    %181 = math.exp %180 : vector<8x128xf32>
    %cst_52 = arith.constant 1.000000e+00 : f32
    %182 = vector.broadcast %cst_52 : f32 to vector<8x128xf32>
    %183 = arith.addf %182, %181 : vector<8x128xf32>
    %184 = arith.divf %182, %183 : vector<8x128xf32>
    %185 = arith.mulf %178, %184 : vector<8x128xf32>
    %186 = arith.mulf %185, %179 : vector<8x128xf32>
    %187 = arith.truncf %186 : vector<8x128xf32> to vector<8x128xbf16>
    %c0_53 = arith.constant 0 : index
    %c0_54 = arith.constant 0 : index
    %188 = vector.load %arg9[%c0_53, %c0_54] : memref<128x64xbf16, #tpu.memory_space<vmem>>, vector<128x64xbf16>
    %cst_55 = arith.constant dense<0.000000e+00> : vector<8x64xf32>
    %189 = tpu.matmul %187, %188, %cst_55 {dimension_numbers = #tpu.dot_dimension_numbers<[1], [0], [0], [1], [0, 0, 1, 1], [], []>} : vector<8x128xbf16>, vector<128x64xbf16>, vector<8x64xf32> -> vector<8x64xf32>
    %190 = arith.addf %161, %189 : vector<8x64xf32>
    %c0_56 = arith.constant 0 : index
    %c0_57 = arith.constant 0 : index
    %c0_58 = arith.constant 0 : index
    %191 = vector.load %arg10[%c0_56, %c0_57, %c0_58] : memref<1x8x64xf32, #tpu.memory_space<vmem>>, vector<1x8x64xf32>
    %192 = vector.shape_cast %191 : vector<1x8x64xf32> to vector<8x64xf32>
    %193 = vector.shape_cast %190 : vector<8x64xf32> to vector<1x8x64xf32>
    tpu.vector_store %arg10[%c0_56, %c0_57, %c0_58], %193 {strides = array<i32>} : memref<1x8x64xf32, #tpu.memory_space<vmem>>, vector<1x8x64xf32>,
    return
  }
  func.func @transform_0(%arg0: i32) -> (i32, i32, i32) {
    %c0_i32 = arith.constant 0 : i32
    %c0_i32_0 = arith.constant 0 : i32
    %c0_i32_1 = arith.constant 0 : i32
    return %arg0, %c0_i32, %c0_i32_0 : i32, i32, i32
  }
  func.func @transform_1(%arg0: i32) -> (i32, i32) {
    %c0_i32 = arith.constant 0 : i32
    %c0_i32_0 = arith.constant 0 : i32
    %c0_i32_1 = arith.constant 0 : i32
    return %c0_i32, %c0_i32_0 : i32, i32
  }
  func.func @transform_2(%arg0: i32) -> (i32, i32) {
    %c0_i32 = arith.constant 0 : i32
    %c0_i32_0 = arith.constant 0 : i32
    %c0_i32_1 = arith.constant 0 : i32
    return %c0_i32, %c0_i32_0 : i32, i32
  }
  func.func @transform_3(%arg0: i32) -> (i32, i32) {
    %c0_i32 = arith.constant 0 : i32
    %c0_i32_0 = arith.constant 0 : i32
    %c0_i32_1 = arith.constant 0 : i32
    return %c0_i32, %c0_i32_0 : i32, i32
  }
  func.func @transform_4(%arg0: i32) -> (i32, i32) {
    %c0_i32 = arith.constant 0 : i32
    %c0_i32_0 = arith.constant 0 : i32
    %c0_i32_1 = arith.constant 0 : i32
    return %c0_i32, %c0_i32_0 : i32, i32
  }
  func.func @transform_5(%arg0: i32) -> (i32, i32) {
    %c0_i32 = arith.constant 0 : i32
    %c0_i32_0 = arith.constant 0 : i32
    %c0_i32_1 = arith.constant 0 : i32
    return %c0_i32, %c0_i32_0 : i32, i32
  }
  func.func @transform_6(%arg0: i32) -> (i32, i32) {
    %c0_i32 = arith.constant 0 : i32
    %c0_i32_0 = arith.constant 0 : i32
    %c0_i32_1 = arith.constant 0 : i32
    return %c0_i32, %c0_i32_0 : i32, i32
  }
  func.func @transform_7(%arg0: i32) -> (i32, i32) {
    %c0_i32 = arith.constant 0 : i32
    %c0_i32_0 = arith.constant 0 : i32
    %c0_i32_1 = arith.constant 0 : i32
    return %c0_i32, %c0_i32_0 : i32, i32
  }
  func.func @transform_8(%arg0: i32) -> (i32, i32) {
    %c0_i32 = arith.constant 0 : i32
    %c0_i32_0 = arith.constant 0 : i32
    %c0_i32_1 = arith.constant 0 : i32
    return %c0_i32, %c0_i32_0 : i32, i32
  }
  func.func @transform_9(%arg0: i32) -> (i32, i32, i32) {
    %c0_i32 = arith.constant 0 : i32
    %c0_i32_0 = arith.constant 0 : i32
    %c0_i32_1 = arith.constant 0 : i32
    return %arg0, %c0_i32, %c0_i32_0 : i32, i32, i32
  }
}

</mosaic_0001>

<bundles_post_ra>
// kernel: tpu_custom_call.1
= control target key start
LH: loop header
LB: loop body
LE: loop exit
PB: predicated region body
PF: predicated region fallthrough
CT: control target
= control target key end

     0   :  { %s2089_s0 = inlined_call_operand.hbm [shape: f32[2,8,64], index: 0, kind: input, shape index: {}]   ;;  %s2090_s1 = inlined_call_operand.hbm [shape: f32[8,16], index: 1, kind: input, shape index: {}]   ;;  %s2091_s2 = inlined_call_operand.hbm [shape: f32[8,16], index: 2, kind: input, shape index: {}]   ;;  %s2092_s3 = inlined_call_operand.vmem [shape: bf16[64,128], index: 3, kind: input, shape index: {}]   ;;  %s2093_s4 = inlined_call_operand.hbm [shape: bf16[64,64], index: 4, kind: input, shape index: {}]   ;;  %s2094_s5 = inlined_call_operand.vmem [shape: f32[1,64], index: 5, kind: input, shape index: {}]   ;;  %s2095_s6 = inlined_call_operand.vmem [shape: f32[1,64], index: 6, kind: input, shape index: {}]   ;;  %s2096_s7 = inlined_call_operand.vmem [shape: bf16[64,256], index: 7, kind: input, shape index: {}]   ;;  %s2097_s8 = inlined_call_operand.vmem [shape: bf16[128,64], index: 8, kind: input, shape index: {}]   ;;  %s2098_s9 = inlined_call_operand.hbm [shape: f32[2,8,64], index: 9, kind: output, shape index: {}]  }
   0x1   :  { %2099 = sst [smem:[#allocation15_spill]] %s2090_s1 }
   0x2   :  { %2100 = sst [smem:[#allocation16_spill]] %s2091_s2 }
   0x3   :  { %2101 = sst [smem:[#allocation17_spill]] %s2093_s4 }
   0x4   :  { %14 = vsyncpa [#allocation3], 0 }
   0x5   :  { %16 = vsyncpa [#allocation3 + $0x1], 0 }
   0x6   :  { %17 = vsyncpa [#allocation6], 0 }
   0x7   :  { %18 = vsyncpa [#allocation9], 0 }
   0x8   :  { %19 = vsyncpa [#allocation4], 0 }
   0x9   :  { %21 = vsyncpa [#allocation4 + $0x1], 0  ;;  %s1739_s30 = smov 0   ;;  %s1741_s10 = smov 0  }
   0xa   :  { %s1743_s11 = smov 0   ;;  %s1745_s12 = smov 0  }
   0xb LB: > { %s1760_s13 = sadd.s32 4294967295, %s1666_s12   ;;  %s1198_s14 = sadd.s32 4294967294, %s1666_s12   ;;  %s1666_s12 = sphi %s1745_s12, %s2115_s12   ;;  %s1662_s11 = sphi %s1743_s11, %s2114_s11   ;;  %s1658_s10 = sphi %s1741_s10, %s2113_s10   ;;  %s1654_s30 = sphi %s1739_s30, %s2112_s30  }
   0xc   : > { %p47_p0 = scmp.ne.s32.totalorder %s1658_s10, %s1654_s30  ;;  %p48_p1 = scmp.eq.s32.totalorder %s1760_s13, 0 }
   0xd   : > { %p239_p2 = scmp.eq.s32.totalorder %s1760_s13, 1  ;;  %p245_p3 = scmp.eq.s32.totalorder %s1198_s14, 1 }
   0xe   : > { %p1769_p4 = por %p48_p1, %p47_p0  ;;  %p1199_p5 = scmp.ge.s32.totalorder %s1666_s12, 1 }
   0xf   : > { %p1774_p6 = por %p245_p3, %p47_p0  ;;  %p252_p7 = scmp.lt.s32.totalorder %s1666_s12, 3 }
  0x10   : > { %s2104_s1 = sld [smem:[#allocation15_spill]]  ;;  %s1668_s21 = smov [#allocation5]  }
  0x11   : > { %p1782_p8 = pnand %p1199_p5, %p252_p7  ;;  %s266_s22 = sshll.u32 %s1668_s21, 4  ;;  %s267_s22 = int_to_ptr.vmem [resolvable:$true] %s266_s22 }
  0x12   : > { %s2106_s2 = sld [smem:[#allocation16_spill]]  ;;  %s1669_s14 = smov [#allocation7]  }
  0x13   : > { %p1365_p10 = pneg %p1782_p8  ;;  %s2108_s4 = sld [smem:[#allocation17_spill]] }
  0x14   : > { %s278_s17 = sshll.u32 %s1669_s14, 4  ;;  %s1670_s18 = smov [#allocation8]   ;;  %s279_s17 = int_to_ptr.vmem [resolvable:$true] %s278_s17 }
  0x15   : > { %p1794_p11 = pnand %p1365_p10, %p48_p1  ;;  %s292_s21 = sshll.u32 %s1670_s18, 4  ;;  %s293_s21 = int_to_ptr.vmem [resolvable:$true] %s292_s21 }
  0x16   : > { %s264_s19 = sshll.u32 %s2104_s1, 4  ;;  %s1671_s23 = smov 64   ;;  %s265_s19 = int_to_ptr.hbm [resolvable:$true] %s264_s19 }
  0x17   : > { %1368 = dma.hbm_to_vmem [thread:$0]  (!%p1794_p11), %s265_s19, 128, %s267_s22, [#allocation6]  }
  0x18   : > { %s276_s25 = sshll.u32 %s2106_s2, 4  ;;  %s1672_s24 = smov 4   ;;  %s277_s25 = int_to_ptr.hbm [resolvable:$true] %s276_s25 }
  0x19   : > { %s290_s29 = sshll.u32 %s2108_s4, 4  ;;  %s1808_s27 = sadd.s32 1, %s1666_s12   ;;  %s291_s29 = int_to_ptr.hbm [resolvable:$true] %s290_s29 }
  0x1a   : > { %1371 = dma.hbm_to_vmem [thread:$0]  (!%p1794_p11), %s277_s25, 128, %s279_s17, [#allocation6]  }
  0x1b   : > { %1374 = dma.hbm_to_vmem [thread:$0]  (!%p1794_p11), %s291_s29, 512, %s293_s21, [#allocation9], %s1671_s23, %s1671_s23, %s1672_s24  }
  0x1c   : > { %s31_s19 = ssub.s32 %s1666_s12, %s1808_s27  ;;  %s34_s22 = sadd.s32 1, %s1662_s11 }
  0x1d   : > { %p32_p12 = scmp.eq.s32.totalorder %s31_s19, 0  ;;  %p41_p13 = scmp.ne.s32.totalorder %s1662_s11, %s1658_s10 }
  0x1e   : > { %p42_p0 = scmp.eq.s32.totalorder %s1666_s12, 0  ;;  %p1386_p5 = scmp.lt.s32.totalorder %s1666_s12, 2 }
  0x1f   : > { %s1817_s28 = scalar_select %p32_p12, %s1662_s11, %s34_s22  }
  0x20   : > { %p1821_p3 = por %p239_p2, %p41_p13  ;;  %s318_s14 = sand.u32 1, %s1662_s11  }
  0x21   : > { %s1205_s17 = sshll.u32 %s1666_s12, 3  ;;  %p43_p7 = por %p42_p0, %p41_p13 }
  0x22   : > { %s1204_s26 = sshll.u32 %s318_s14, 3  ;;  %s326_s21 = scalar_lea.hbm %s2089_s0, %s1205_s17 }
  0x23   : > { %s328_s23 = sshll.u32 %s326_s21, 4  ;;  %s322_s24 = scalar_lea.vmem [#allocation2], %s1204_s26  ;;  %s329_s23 = int_to_ptr.hbm [resolvable:$true] %s328_s23 }
  0x24   : > { %s330_s19 = sshll.u32 %s322_s24, 4  ;;  %p1831_p10 = pnand %p1386_p5, %p43_p7  ;;  %s331_s19 = int_to_ptr.vmem [resolvable:$true] %s330_s19 }
  0x25   : > { %s319_s1 = scalar_lea.sflag [#allocation3], %s318_s14  ;;  %s1562_s2 = sshra.s32 %s329_s23, 4  ;;  %s1563_s2 = int_to_ptr.hbm [resolvable:$true] %s1562_s2 }
  0x26   : > { %s1564_s4 = scalar_lea.hbm %s1563_s2, 8  ;;  %p1566_p11 = pneg %p1831_p10 }
  0x27   : > { %p1565_p2 = scmp.ne.s32.totalorder %s1563_s2, %s1564_s4  ;;  %s1569_s26 = scalar_lea.hbm %s2089_s0, 16 }
  0x28   : > { %p1570_p0 = scmp.lt.s32.totalorder %s1563_s2, %s2089_s0  ;;  %p1571_p5 = scmp.lt.s32.totalorder %s1569_s26, %s1564_s4 }
  0x29   : > { %p1567_p12 = pnand %p1566_p11, %p1565_p2 }
  0x2a   : > { %p1572_p7 = por %p1571_p5, %p1570_p0 }
  0x2b   : > { %p1568_p13 = pneg %p1567_p12 }
  0x2d   : > { %p1573_p9 = pnand %p1572_p7, %p1568_p13 }
  0x2f   : > { %1576 = shalt.err (!%p1573_p9)
}
  0x30   : > { %1378 = dma.hbm_to_vmem [thread:$0]  (!%p1831_p10), %s329_s23, 128, %s331_s19, %s319_s1  }
  0x31   : > { %339 = sbr.rel (%p1782_p8) target bundleno = 2021 (0x7e5), region = 56  ;;  %s1848_s14 = sand.u32 (!%p1782_p8), 1, %s1658_s10  }
  0x32   : > { %s1207_s24 = sshll.u32 (!%p1782_p8), %s1848_s14, 3  ;;  %s342_s17 = scalar_lea.sflag (!%p1782_p8), [#allocation3], %s1848_s14 }
  0x33   : > { %s345_s2 = scalar_lea.vmem (!%p1782_p8), [#allocation2], %s1207_s24 }
  0x36   : > { %1637 = dma.done.wait (%p1769_p4), %s342_s17, 128  }
  0x37   : > { %1639 = vsyncadd (%p1769_p4), %s342_s17, 4294967168 }
  0x38   : > { %1641 = dma.done.wait (%p48_p1), [#allocation6], 256  }
  0x39   : > { %1643 = vsyncadd (%p48_p1), [#allocation6], 4294967040 }
  0x3a   : > { %1645 = dma.done.wait (%p48_p1), [#allocation9], 512  }
  0x3b   : > { %1647 = vsyncadd (%p48_p1), [#allocation9], 4294966784  ;;  %v1866_v0 = vld [vmem:[%s345_s2] sm:$0xff]  ;;  %vm408_vm0 = vcmask 523264   ;;  %v1673_v3 = vmov 64.0   ;;  %v1328_v5 = vld [vmem:[%s2092_s3 + $0x18] sm:$0xff] }
  0x3c   : > { %v407_v1 = vmul.f32 %v1866_v0, %v1866_v0  ;;  %1446 = vrcp.f32 %v1673_v3  ;;  %476 = vmatpush.bf16.msra.mxu0 %v1328_v5  ;;  %v1327_v7 = vld [vmem:[%s2092_s3 + $0x10] sm:$0xff]  ;;  %v1326_v9 = vld [vmem:[%s2092_s3 + $0x8] sm:$0xff]  ;;  %v1325_v11 = vld [vmem:[%s2092_s3] sm:$0xff]  ;;  %s1674_s21 = smov 72   ;;  %s1675_s17 = smov 56   ;;  %vm499_vm5 = vcmask 64512  }
  0x3d   : > { %v1444_v23 = vld [vmem:[%s2094_s5] ss:$0 sm:$0xff]  ;;  %v398_v31 = vld [vmem:[#allocation5] sm:$0xff]  ;;  %s1676_s2 = smov 64   ;;  %s1677_s1 = smov 40   ;;  %v399_v35 = vld [vmem:[#allocation7] sm:$0xff] }
  0x3e   : > { %v409_v2 = vsel %vm408_vm0, %v407_v1, 0.0  ;;  %s1678_s4 = smov 120   ;;  %s1679_s15 = smov 104   ;;  %vm545_vm6 = vcmask 130048   ;;  %vm582_vm7 = vcmask 1043456   ;;  %vm828_vm9 = vcmask 261120  }
  0x3f   : > { %410 = vadd.xlane.f32.xlu0 %v409_v2  ;;  %s1680_s20 = smov 16   ;;  %s1681_s23 = smov 80   ;;  %vm831_vm10 = vcmask 392192  }
  0x40   : > { %477 = vmatpush.bf16.msra.mxu0 %v1327_v7  ;;  %s1682_s19 = smov 48   ;;  %s1683_s22 = smov 8  }
  0x41   : > { %s1684_s29 = smov 88   ;;  %s1685_s26 = smov 32  }
  0x42   : > { %v1447_v4 = vpop.eup %1446  ;;  %s1686_s18 = smov 112  }
  0x43   : > { %v413_v6 = vmul.f32 64.0, %v1447_v4  ;;  %vm417_vm1 = vweird.f32 %v1447_v4 }
  0x44   : > { %478 = vmatpush.bf16.msra.mxu0 %v1326_v9 }
  0x45   : > { %v414_v8 = vsub.f32 1.0, %v413_v6 }
  0x47   : > { %v415_v10 = vmul.f32 %v1447_v4, %v414_v8 }
  0x48   : > { %479 = vmatpush.bf16.msra.mxu0 %v1325_v11 }
  0x49   : > { %v416_v12 = vadd.f32 %v1447_v4, %v415_v10 }
  0x4b   : > { %v1883_v13 = vsel %vm417_vm1, %v1447_v4, %v416_v12 }
  0xb2   : > { %v411_v14 = vpop.xlane.xlu0 %410 }
  0xb3   : > { %v419_v15 = vmul.f32 %v1883_v13, %v411_v14 }
  0xb5   : > { %v420_v16 = vadd.f32 1e-05, %v419_v15 }
  0xb7   : > { %1448 = vrsqrt.f32 %v420_v16  ;;  %vm427_vm3 = vweird.f32 %v420_v16 }
  0xbd   : > { %v1449_v17 = vpop.eup %1448 }
  0xbe   : > { %v422_v18 = vmul.f32 %v1449_v17, %v420_v16  ;;  %vm428_vm2 = vweird.f32 %v1449_v17 }
  0xbf   : > { %vm429_vm4 = vmor %vm427_vm3, %vm428_vm2 }
  0xc0   : > { %v423_v19 = vmul.f32 %v1449_v17, %v422_v18  ;;  %v400_v18 = vlaneseq }
  0xc2   : > { %v424_v20 = vmul.f32 0.5, %v423_v19  ;;  %v401_v19 = vshrl.u32 %v400_v18, 7 }
  0xc4   : > { %v425_v21 = vsub.f32 1.5, %v424_v20  ;;  %v403_v20 = vand.u32 127, %v400_v18 }
  0xc6   : > { %v426_v22 = vmul.f32 %v1449_v17, %v425_v21  ;;  %vm404_vm8 = vcmp.le.s32.totalorder %v403_v20, %v401_v19 }
  0xc8   : > { %v430_v24 = vsel %vm429_vm4, %v1449_v17, %v426_v22 }
  0xc9   : > { %v431_v25 = vmul.f32 %v430_v24, %v1866_v0 }
  0xcb   : > { %v435_v26 = vmul.f32 %v1444_v23, %v431_v25 }
  0xcd   : > { %v436_v27 = vpack.c.bf16 %v435_v26, %v435_v26 }
  0xcf   : > { %1228 = vmatmul.msk.bf16.vlgmr.msra.gmra.mxu0 %vm408_vm0, %v436_v27 }
 0x14c   : > { %v1891_v28 = vpop.f32.mrf.mxu0 }
 0x14d   : > { %496 = vrot.lane.b32.xlu1 %v1891_v28, %s1674_s21  ;;  %v490_v29 = vsub.f32 0.0, %v1891_v28  ;;  %v1897_v32 = vmul.f32 0.25, %v1891_v28  ;;  %v1928_v7 = vpack.c.bf16 %v1891_v28, %v1891_v28 }
 0x14f   : > { %492 = vrot.lane.b32.xlu0 %v490_v29, %s1675_s17  ;;  %v529_v33 = vsub.f32 0.0, %v1897_v32  ;;  %v528_v55 = vmul.f32 %v1897_v32, %v398_v31 }
 0x154   : > { %v483_v30 = vpop.f32.mrf.mxu0 }
 0x155   : > { %486 = vrot.lane.b32.xlu1 %v398_v31, %s1676_s2 }
 0x157   : > { %513 = vrot.lane.b32.xlu0 %v490_v29, %s1677_s1  ;;  %s395_s1 = scalar_lea.vmem [#allocation10], %s1207_s24  ;;  %s1612_s24 = scalar_lea.hbm %s2098_s9, 16 }
 0x15d   : > { %531 = vrot.lane.b32.xlu1 %v529_v33, %s1678_s4 }
 0x15f   : > { %674 = vrot.lane.b32.xlu0 %v1897_v32, %s1679_s15 }
 0x165   : > { %605 = vrot.lane.b32.xlu1 %v529_v33, %s1679_s15 }
 0x167   : > { %601 = vrot.lane.b32.xlu0 %v398_v31, %s1680_s20 }
 0x16d   : > { %516 = vrot.lane.b32.xlu1 %v1891_v28, %s1675_s17 }
 0x175   : > { %748 = vrot.lane.b32.xlu1 %v529_v33, %s1674_s21  ;;  %s1688_s21 = smov 96  }
 0x1bf   : > { %v497_v34 = vpop.permute.xlu1 %496 }
 0x1c1   : > { %v493_v36 = vpop.permute.xlu0 %492 }
 0x1c2   : > { %v500_v37 = vsel %vm499_vm5, %v493_v36, %v497_v34 }
 0x1c3   : > { %v501_v38 = vmul.f32 %v500_v37, %v399_v35 }
 0x1c5   : > { %503 = vrot.lane.b32.xlu2 %v501_v38, %s1676_s2 }
 0x1c7   : > { %v487_v39 = vpop.permute.xlu1 %486 }
 0x1c8   : > { %v489_v46 = vmul.f32 %v487_v39, %v1891_v28 }
 0x1c9   : > { %v514_v42 = vpop.permute.xlu0 %513 }
 0x1cf   : > { %v532_v40 = vpop.permute.xlu1 %531 }
 0x1d1   : > { %v675_v61 = vpop.permute.xlu0 %674 }
 0x1d7   : > { %v606_v41 = vpop.permute.xlu1 %605 }
 0x1d9   : > { %v602_v5 = vpop.permute.xlu0 %601 }
 0x1da   : > { %v604_v21 = vmul.f32 %v602_v5, %v1897_v32 }
 0x1df   : > { %v517_v43 = vpop.permute.xlu1 %516 }
 0x1e0   : > { %v519_v44 = vsel %vm499_vm5, %v514_v42, %v517_v43 }
 0x1e1   : > { %v520_v45 = vmul.f32 %v519_v44, %v399_v35 }
 0x1e3   : > { %522 = vrot.lane.b32.xlu0 %v520_v45, %s1681_s23 }
 0x1e7   : > { %v749_v2 = vpop.permute.xlu1 %748 }
 0x1eb   : > { %744 = vrot.lane.b32.xlu0 %v398_v31, %s1682_s19 }
 0x21f   : > { %v504_v47 = vpop.permute.xlu2 %503 }
 0x220   : > { %v506_v48 = vadd.f32 %v504_v47, %v489_v46 }
 0x222   : > { %v507_v49 = vpack.c.bf16 %v506_v48, %v506_v48 }
 0x224   : > { %543 = vrot.lane.b32.xlu2 %v507_v49, %s1676_s2 }
 0x22c   : > { %535 = vrot.lane.b32.xlu2 %v1897_v32, %s1683_s22 }
 0x234   : > { %608 = vrot.lane.b32.xlu2 %v1897_v32, %s1678_s4  ;;  %s1096_s4 = sshll.u32 %s395_s1, 4  ;;  %s1097_s4 = int_to_ptr.vmem [resolvable:$true] %s1096_s4 }
 0x23c   : > { %671 = vrot.lane.b32.xlu2 %v529_v33, %s1684_s29 }
 0x244   : > { %751 = vrot.lane.b32.xlu2 %v1897_v32, %s1684_s29 }
 0x24c   : > { %509 = vrot.lane.b32.xlu2 %v398_v31, %s1681_s23 }
 0x254   : > { %667 = vrot.lane.b32.xlu2 %v398_v31, %s1685_s26 }
 0x255   : > { %v523_v10 = vpop.permute.xlu0 %522 }
 0x25d   : > { %v745_v33 = vpop.permute.xlu0 %744 }
 0x25e   : > { %v747_v37 = vmul.f32 %v745_v33, %v1897_v32 }
 0x27e   : > { %v544_v50 = vpop.permute.xlu2 %543 }
 0x27f   : > { %v550_v51 = vsel %vm545_vm6, %v544_v50, 0 }
 0x280   : > { %559 = vmatpush.bf16.xpose.msra.mxu1 %v550_v51 }
 0x286   : > { %v536_v52 = vpop.permute.xlu2 %535 }
 0x287   : > { %v538_v53 = vsel %vm499_vm5, %v532_v40, %v536_v52 }
 0x288   : > { %v539_v54 = vmul.f32 %v538_v53, %v399_v35 }
 0x28a   : > { %v540_v56 = vadd.f32 %v539_v54, %v528_v55 }
 0x28c   : > { %v541_v57 = vpack.c.bf16 %v540_v56, %v540_v56 }
 0x28e   : > { %1229 = vmatmul.msk.bf16.vlgmr.msra.gmra.mxu1 %vm545_vm6, %v541_v57  ;;  %v609_v58 = vpop.permute.xlu2 %608 }
 0x28f   : > { %v611_v59 = vsel %vm499_vm5, %v606_v41, %v609_v58 }
 0x290   : > { %v612_v60 = vmul.f32 %v611_v59, %v399_v35 }
 0x292   : > { %614 = vrot.lane.b32.xlu1 %v612_v60, %s1680_s20 }
 0x296   : > { %v672_v62 = vpop.permute.xlu2 %671 }
 0x297   : > { %v677_v63 = vsel %vm499_vm5, %v672_v62, %v675_v61 }
 0x298   : > { %v678_v1 = vmul.f32 %v677_v63, %v399_v35 }
 0x29a   : > { %680 = vrot.lane.b32.xlu2 %v678_v1, %s1685_s26 }
 0x29e   : > { %v752_v3 = vpop.permute.xlu2 %751 }
 0x29f   : > { %v754_v4 = vsel %vm499_vm5, %v749_v2, %v752_v3 }
 0x2a0   : > { %v755_v6 = vmul.f32 %v754_v4, %v399_v35 }
 0x2a2   : > { %757 = vrot.lane.b32.xlu0 %v755_v6, %s1682_s19  ;;  %577 = vrot.lane.b32.xlu2 %v1928_v7, %s1685_s26 }
 0x2a6   : > { %v510_v8 = vpop.permute.xlu2 %509 }
 0x2a7   : > { %v512_v9 = vmul.f32 %v510_v8, %v1891_v28  ;;  %v1687_v28 = vmov -1e+30  }
 0x2a8   : > { %v405_v29 = vsel %vm404_vm8, 0.0, %v1687_v28 }
 0x2a9   : > { %v525_v11 = vadd.f32 %v523_v10, %v512_v9 }
 0x2ab   : > { %v526_v12 = vpack.c.bf16 %v525_v11, %v525_v11 }
 0x2ad   : > { %689 = vrot.lane.b32.xlu2 %v526_v12, %s1682_s19 }
 0x2ae   : > { %v668_v14 = vpop.permute.xlu2 %667 }
 0x2af   : > { %v670_v27 = vmul.f32 %v668_v14, %v1897_v32 }
 0x2f4   : > { %v681_v15 = vpop.permute.xlu2 %680 }
 0x2f5   : > { %v683_v30 = vadd.f32 %v681_v15, %v670_v27 }
 0x2f7   : > { %v684_v36 = vpack.c.bf16 %v683_v30, %v683_v30 }
 0x2fc   : > { %v578_v16 = vpop.permute.xlu2 %577 }
 0x2fd   : > { %v584_v17 = vsel %vm582_vm7, %v578_v16, 0 }
 0x2fe   : > { %593 = vmatpush.bf16.msra.mxu3 %v584_v17  ;;  %659 = vmatpush.bf16.msra.mxu2 %v584_v17 }
 0x302   : > { %632 = vmatpush.bf16.xpose.msrb.mxu3 %v550_v51 }
 0x304   : > { %v615_v22 = vpop.permute.xlu1 %614 }
 0x305   : > { %v617_v23 = vadd.f32 %v615_v22, %v604_v21 }
 0x307   : > { %v618_v24 = vpack.c.bf16 %v617_v23, %v617_v23  ;;  %v690_v25 = vpop.permute.xlu2 %689 }
 0x308   : > { %v695_v26 = vsel %vm545_vm6, %v690_v25, 0 }
 0x309   : > { %620 = vrot.lane.b32.xlu0 %v618_v24, %s1686_s18  ;;  %704 = vmatpush.bf16.xpose.msrb.mxu1 %v695_v26  ;;  %s1322_s18 = sshll.u32 %s1760_s13, 3 }
 0x30a   : > { %775 = vmatpush.bf16.xpose.msrb.mxu0 %v695_v26  ;;  %s1094_s2 = scalar_lea.hbm %s2098_s9, %s1322_s18 }
 0x30b   : > { %v561_v31 = vpop.f32.mrf.mxu1  ;;  %s1098_s15 = sshll.u32 %s1094_s2, 4  ;;  %s1099_s15 = int_to_ptr.hbm [resolvable:$true] %s1098_s15 }
 0x30c   : > { %v562_v34 = vadd.f32 %v561_v31, %v405_v29 }
 0x30e   : > { %v565_v35 = vsel %vm499_vm5, %v562_v34, -inf }
 0x30f   : > { %566 = vmax.xlane.f32.xlu1 %v565_v35 }
 0x311   : > { %686 = vrot.lane.b32.xlu0 %v684_v36, %s1688_s21 }
 0x313   : > { %v563_v38 = vpop.f32.mrf.mxu1 }
 0x314   : > { %v758_v39 = vpop.permute.xlu0 %757 }
 0x315   : > { %v760_v40 = vadd.f32 %v758_v39, %v747_v37 }
 0x317   : > { %v761_v41 = vpack.c.bf16 %v760_v40, %v760_v40 }
 0x319   : > { %763 = vrot.lane.b32.xlu2 %v761_v41, %s1681_s23  ;;  %s1606_s23 = sshra.s32 %s1099_s15, 4  ;;  %s1607_s23 = int_to_ptr.hbm [resolvable:$true] %s1606_s23 }
 0x31a   : > { %p1613_p9 = scmp.lt.s32.totalorder %s1607_s23, %s2098_s9 }
 0x373   : > { %v764_v42 = vpop.permute.xlu2 %763 }
 0x374   : > { %1235 = vmatmul.msk.bf16.vlgmr.msrb.gmra.mxu0 %vm545_vm6, %v764_v42 }
 0x37b   : > { %v621_v43 = vpop.permute.xlu0 %620 }
 0x382   : > { %v567_v44 = vpop.xlane.xlu1 %566 }
 0x383   : > { %v568_v45 = vsub.f32 %v562_v34, %v567_v44  ;;  %v687_v46 = vpop.permute.xlu0 %686 }
 0x384   : > { %1233 = vmatmul.msk.bf16.vlgmr.msrb.gmra.mxu1 %vm545_vm6, %v687_v46 }
 0x385   : > { %v569_v47 = vmul.f32 1.442695, %v568_v45 }
 0x387   : > { %1450 = vpow2.f32 %v569_v47  ;;  %v1332_v47 = vld [vmem:[#allocation8 + $0x18] sm:$0xff] }
 0x388   : > { %872 = vmatpush.bf16.msra.mxu1 %v1332_v47  ;;  %v1342_v47 = vld [vmem:[%s2097_s8 + $0x8] sm:$0xff] }
 0x38d   : > { %v1451_v48 = vpop.eup %1450 }
 0x38e   : > { %v575_v49 = vpack.c.bf16 %v1451_v48, %v1451_v48  ;;  %v571_v14 = vsel %vm499_vm5, %v1451_v48, 0.0  ;;  %v1331_v48 = vld [vmem:[#allocation8 + $0x10] sm:$0xff] }
 0x38f   : > { %873 = vmatpush.bf16.msra.mxu1 %v1331_v48  ;;  %v1341_v48 = vld [vmem:[%s2097_s8] sm:$0xff] }
 0x390   : > { %1230 = vmatmul.msk.bf16.vlgmr.msra.gmra.mxu3 %vm499_vm5, %v575_v49  ;;  %v1330_v49 = vld [vmem:[#allocation8 + $0x8] sm:$0xff] }
 0x393   : > { %874 = vmatpush.bf16.msra.mxu1 %v1330_v49 }
 0x3a0   : > { %1231 = vmatmul.msk.bf16.vlgmr.msrb.gmra.mxu3 %vm545_vm6, %v621_v43 }
 0x3f1   : > { %v777_v32 = vpop.f32.mrf.mxu0 }
 0x3f2   : > { %v778_v50 = vadd.f32 %v777_v32, %v405_v29  ;;  %v1329_v32 = vld [vmem:[#allocation8] sm:$0xff] }
 0x3f3   : > { %875 = vmatpush.bf16.msra.mxu1 %v1329_v32 }
 0x3f4   : > { %v781_v51 = vsel %vm499_vm5, %v778_v50, -inf }
 0x3f5   : > { %782 = vmax.xlane.f32.xlu1 %v781_v51 }
 0x3f9   : > { %v779_v52 = vpop.f32.mrf.mxu0 }
 0x401   : > { %v706_v53 = vpop.f32.mrf.mxu1 }
 0x402   : > { %v707_v54 = vadd.f32 %v706_v53, %v405_v29 }
 0x404   : > { %v710_v55 = vsel %vm499_vm5, %v707_v54, -inf }
 0x405   : > { %711 = vmax.xlane.f32.xlu2 %v710_v55 }
 0x409   : > { %v708_v56 = vpop.f32.mrf.mxu1 }
 0x40e   : > { %721 = vrot.lane.b32.xlu1 %v1928_v7, %s1680_s20 }
 0x413   : > { %v1950_v57 = vpop.f32.mrf.mxu3 }
 0x41b   : > { %v597_v58 = vpop.f32.mrf.mxu3 }
 0x423   : > { %v634_v59 = vpop.f32.mrf.mxu3 }
 0x424   : > { %v635_v60 = vadd.f32 %v634_v59, %v405_v29 }
 0x426   : > { %v638_v61 = vsel %vm499_vm5, %v635_v60, -inf }
 0x427   : > { %639 = vmax.xlane.f32.xlu0 %v638_v61 }
 0x42b   : > { %v636_v62 = vpop.f32.mrf.mxu3 }
 0x468   : > { %v783_v63 = vpop.xlane.xlu1 %782 }
 0x469   : > { %v784_v1 = vsub.f32 %v778_v50, %v783_v63 }
 0x46b   : > { %v785_v2 = vmul.f32 1.442695, %v784_v1 }
 0x46d   : > { %1452 = vpow2.f32 %v785_v2  ;;  %v1280_v2 = vld [vmem:[%s2096_s7 + $0x30] sm:$0xf] }
 0x473   : > { %v1453_v3 = vpop.eup %1452 }
 0x474   : > { %v787_v4 = vsel %vm499_vm5, %v1453_v3, 0.0  ;;  %v791_v21 = vpack.c.bf16 %v1453_v3, %v1453_v3  ;;  %v1340_v3 = vld [vmem:[%s2096_s7 + $0x34] sm:$0xf0] }
 0x475   : > { %788 = vadd.xlane.f32.xlu2 %v787_v4  ;;  %v1281_v4 = vor.u32 %v1340_v3, %v1280_v2 }
 0x478   : > { %v712_v5 = vpop.xlane.xlu2 %711 }
 0x479   : > { %v713_v6 = vsub.f32 %v707_v54, %v712_v5  ;;  %v1282_v5 = vld [vmem:[%s2096_s7 + $0x38] sm:$0xf0] }
 0x47b   : > { %v714_v7 = vmul.f32 1.442695, %v713_v6 }
 0x47d   : > { %1454 = vpow2.f32 %v714_v7  ;;  %v1272_v7 = vld [vmem:[%s2096_s7 + $0x20] sm:$0xf] }
 0x480   : > { %v722_v8 = vpop.permute.xlu1 %721 }
 0x481   : > { %v727_v9 = vsel %vm582_vm7, %v722_v8, 0  ;;  %v1338_v8 = vld [vmem:[%s2096_s7 + $0x24] sm:$0xf0] }
 0x482   : > { %736 = vmatpush.bf16.msra.mxu3 %v727_v9  ;;  %802 = vmatpush.bf16.msrb.mxu2 %v727_v9  ;;  %v1337_v9 = vld [vmem:[%s2096_s7 + $0x24] sm:$0xf] }
 0x483   : > { %v1455_v10 = vpop.eup %1454 }
 0x484   : > { %v720_v11 = vpack.c.bf16 %v1455_v10, %v1455_v10  ;;  %v716_v12 = vsel %vm499_vm5, %v1455_v10, 0.0  ;;  %v1273_v10 = vor.u32 %v1338_v8, %v1272_v7 }
 0x485   : > { %717 = vadd.xlane.f32.xlu0 %v716_v12 }
 0x486   : > { %1234 = vmatmul.msk.bf16.vlgmr.msra.gmra.mxu3 %vm499_vm5, %v720_v11  ;;  %v1274_v11 = vld [vmem:[%s2096_s7 + $0x28] sm:$0xf0] }
 0x487   : > { %960 = vmatpush.bf16.msrb.mxu3 %v1281_v4  ;;  %v1277_v12 = vor.u32 %v1337_v9, %v1274_v11 }
 0x48b   : > { %961 = vmatpush.bf16.msrb.mxu3 %v1273_v10 }
 0x48d   : > { %572 = vadd.xlane.f32.xlu0 %v571_v14  ;;  %v1264_v14 = vld [vmem:[%s2096_s7 + $0x10] sm:$0xf] }
 0x49a   : > { %v640_v15 = vpop.xlane.xlu0 %639 }
 0x49b   : > { %v641_v16 = vsub.f32 %v635_v60, %v640_v15  ;;  %v1336_v15 = vld [vmem:[%s2096_s7 + $0x14] sm:$0xf0] }
 0x49d   : > { %v642_v17 = vmul.f32 1.442695, %v641_v16  ;;  %v1335_v16 = vld [vmem:[%s2096_s7 + $0x14] sm:$0xf] }
 0x49f   : > { %1456 = vpow2.f32 %v642_v17  ;;  %v1265_v17 = vor.u32 %v1336_v15, %v1264_v14 }
 0x4a1   : > { %962 = vmatpush.bf16.msrb.mxu3 %v1265_v17 }
 0x4a5   : > { %v1457_v18 = vpop.eup %1456 }
 0x4a6   : > { %v644_v19 = vsel %vm499_vm5, %v1457_v18, 0.0  ;;  %v648_v20 = vpack.c.bf16 %v1457_v18, %v1457_v18  ;;  %v1266_v18 = vld [vmem:[%s2096_s7 + $0x18] sm:$0xf0] }
 0x4a7   : > { %645 = vadd.xlane.f32.xlu1 %v644_v19  ;;  %v1269_v19 = vor.u32 %v1335_v16, %v1266_v18 }
 0x4a8   : > { %1232 = vmatmul.msk.bf16.vlgmr.msra.gmra.mxu2 %vm499_vm5, %v648_v20  ;;  %v1256_v20 = vld [vmem:[%s2096_s7] sm:$0xf] }
 0x4b8   : > { %1236 = vmatmul.msk.bf16.vlgmr.msrb.gmra.mxu2 %vm499_vm5, %v791_v21  ;;  %v1334_v21 = vld [vmem:[%s2096_s7 + $0x4] sm:$0xf0] }
 0x4e8   : > { %v789_v37 = vpop.xlane.xlu2 %788 }
 0x4f8   : > { %v718_v22 = vpop.xlane.xlu0 %717 }
 0x4f9   : > { %1458 = vrcp.f32 %v718_v22  ;;  %v1333_v22 = vld [vmem:[%s2096_s7 + $0x4] sm:$0xf] }
 0x4ff   : > { %v1459_v23 = vpop.eup %1458 }
 0x500   : > { %v573_v50 = vpop.xlane.xlu0 %572 }
 0x509   : > { %v738_v24 = vpop.f32.mrf.mxu3 }
 0x50a   : > { %v742_v25 = vmul.f32 %v1459_v23, %v738_v24  ;;  %v1257_v23 = vor.u32 %v1334_v21, %v1256_v20  ;;  %v1258_v24 = vld [vmem:[%s2096_s7 + $0x8] sm:$0xf0] }
 0x50c   : > { %v743_v26 = vpack.c.bf16 %v742_v25, %v742_v25  ;;  %v1261_v25 = vor.u32 %v1333_v22, %v1258_v24  ;;  %963 = vmatpush.bf16.msrb.mxu3 %v1257_v23 }
 0x50e   : > { %v816_v27 = vunpack.c.l.b16 %v743_v26 }
 0x510   : > { %v817_v28 = vpack.c.b16 %v816_v27, %v816_v27 }
 0x511   : > { %v740_v29 = vpop.f32.mrf.mxu3 }
 0x512   : > { %818 = vrot.lane.b32.xlu0 %v817_v28, %s1685_s26 }
 0x51a   : > { %v646_v30 = vpop.xlane.xlu1 %645 }
 0x51b   : > { %1460 = vrcp.f32 %v646_v30 }
 0x51c   : > { %1462 = vrcp.f32 %v789_v37 }
 0x51d   : > { %1464 = vrcp.f32 %v573_v50 }
 0x521   : > { %v1461_v31 = vpop.eup %1460 }
 0x522   : > { %v1463_v40 = vpop.eup %1462 }
 0x523   : > { %v1465_v51 = vpop.eup %1464 }
 0x524   : > { %v599_v52 = vmul.f32 %v1465_v51, %v1950_v57 }
 0x526   : > { %v600_v54 = vpack.c.bf16 %v599_v52, %v599_v52 }
 0x52b   : > { %v661_v33 = vpop.f32.mrf.mxu2 }
 0x52c   : > { %v665_v34 = vmul.f32 %v1461_v31, %v661_v33 }
 0x52e   : > { %v666_v35 = vpack.c.bf16 %v665_v34, %v665_v34 }
 0x530   : > { %v811_v36 = vunpack.c.l.b16 %v666_v35 }
 0x532   : > { %v812_v38 = vpack.c.b16 %v811_v36, %v811_v36  ;;  %v1445_v36 = vld [vmem:[%s2095_s6] ss:$0 sm:$0xff] }
 0x533   : > { %v663_v39 = vpop.f32.mrf.mxu2 }
 0x534   : > { %813 = vrot.lane.b32.xlu2 %v812_v38, %s1680_s20  ;;  %s1084_s20 = scalar_lea.sflag [#allocation4], %s1848_s14 }
 0x53b   : > { %v804_v41 = vpop.f32.mrf.mxu2 }
 0x53c   : > { %v808_v42 = vmul.f32 %v1463_v40, %v804_v41  ;;  %v1348_v40 = vld [vmem:[%s2097_s8 + $0x38] sm:$0xff]  ;;  %v1347_v41 = vld [vmem:[%s2097_s8 + $0x30] sm:$0xff] }
 0x53d   : > { %1068 = vmatpush.bf16.msra.mxu2 %v1348_v40 }
 0x53e   : > { %v809_v43 = vpack.c.bf16 %v808_v42, %v808_v42  ;;  %v1346_v42 = vld [vmem:[%s2097_s8 + $0x28] sm:$0xff] }
 0x540   : > { %v821_v44 = vunpack.c.l.b16 %v809_v43  ;;  %v1345_v43 = vld [vmem:[%s2097_s8 + $0x20] sm:$0xff] }
 0x541   : > { %1069 = vmatpush.bf16.msra.mxu2 %v1347_v41 }
 0x542   : > { %v822_v45 = vpack.c.b16 %v821_v44, %v821_v44  ;;  %v1344_v44 = vld [vmem:[%s2097_s8 + $0x18] sm:$0xff] }
 0x543   : > { %v806_v46 = vpop.f32.mrf.mxu2 }
 0x544   : > { %823 = vrot.lane.b32.xlu2 %v822_v45, %s1682_s19  ;;  %v1343_v45 = vld [vmem:[%s2097_s8 + $0x10] sm:$0xff]  ;;  %s1608_s19 = scalar_lea.hbm %s1607_s23, 8 }
 0x545   : > { %1070 = vmatpush.bf16.msra.mxu2 %v1346_v42  ;;  %p1609_p1 = scmp.ne.s32.totalorder %s1607_s23, %s1608_s19  ;;  %p1614_p10 = scmp.lt.s32.totalorder %s1612_s24, %s1608_s19 }
 0x547   : > { %p1610_p4 = pnand %p1609_p1, %p1821_p3  ;;  %p1615_p2 = por %p1614_p10, %p1613_p9 }
 0x549   : > { %1071 = vmatpush.bf16.msra.mxu2 %v1345_v43  ;;  %p1611_p8 = pneg %p1610_p4 }
 0x54b   : > { %p1616_p11 = pnand %p1615_p2, %p1611_p8 }
 0x54d   : > { %1072 = vmatpush.bf16.msra.mxu2 %v1344_v44 }
 0x551   : > { %1073 = vmatpush.bf16.msra.mxu2 %v1343_v45 }
 0x555   : > { %1074 = vmatpush.bf16.msra.mxu2 %v1342_v47 }
 0x559   : > { %1075 = vmatpush.bf16.msra.mxu2 %v1341_v48 }
 0x584   : > { %v819_v56 = vpop.permute.xlu0 %818 }
 0x58e   : > { %v814_v53 = vpop.permute.xlu2 %813 }
 0x58f   : > { %v827_v55 = vsel %vm545_vm6, %v600_v54, %v814_v53 }
 0x590   : > { %v830_v58 = vsel %vm828_vm9, %v827_v55, %v819_v56 }
 0x59e   : > { %v824_v59 = vpop.permute.xlu2 %823 }
 0x59f   : > { %v833_v60 = vsel %vm831_vm10, %v830_v58, %v824_v59 }
 0x5a0   : > { %1253 = vmatmul.msk.bf16.vlgmr.msra.gmra.mxu1 %vm408_vm0, %v833_v60 }
 0x61d   : > { %v877_v61 = vpop.f32.mrf.mxu1 }
 0x61e   : > { %v1968_v62 = vadd.f32 %v877_v61, %v1866_v0  ;;  %v1339_v0 = vld [vmem:[%s2096_s7 + $0x34] sm:$0xf] }
 0x61f   : > { %v1285_v6 = vor.u32 %v1339_v0, %v1282_v5 }
 0x620   : > { %v883_v63 = vmul.f32 %v1968_v62, %v1968_v62 }
 0x621   : > { %973 = vmatpush.bf16.msra.mxu0 %v1285_v6 }
 0x622   : > { %v884_v57 = vsel %vm408_vm0, %v883_v63, 0.0 }
 0x623   : > { %885 = vadd.xlane.f32.xlu0 %v884_v57 }
 0x625   : > { %v879_v1 = vpop.f32.mrf.mxu1  ;;  %974 = vmatpush.bf16.msra.mxu0 %v1277_v12 }
 0x629   : > { %975 = vmatpush.bf16.msra.mxu0 %v1269_v19 }
 0x62d   : > { %976 = vmatpush.bf16.msra.mxu0 %v1261_v25 }
 0x696   : > { %v886_v26 = vpop.xlane.xlu0 %885 }
 0x697   : > { %v887_v27 = vmul.f32 %v886_v26, %v1883_v13 }
 0x699   : > { %v888_v28 = vadd.f32 1e-05, %v887_v27 }
 0x69b   : > { %1466 = vrsqrt.f32 %v888_v28  ;;  %vm895_vm12 = vweird.f32 %v888_v28 }
 0x6a1   : > { %v1467_v29 = vpop.eup %1466 }
 0x6a2   : > { %v890_v30 = vmul.f32 %v1467_v29, %v888_v28  ;;  %vm896_vm11 = vweird.f32 %v1467_v29 }
 0x6a3   : > { %vm897_vm13 = vmor %vm895_vm12, %vm896_vm11 }
 0x6a4   : > { %v891_v31 = vmul.f32 %v1467_v29, %v890_v30 }
 0x6a6   : > { %v892_v33 = vmul.f32 0.5, %v891_v31 }
 0x6a8   : > { %v893_v34 = vsub.f32 1.5, %v892_v33 }
 0x6aa   : > { %v894_v35 = vmul.f32 %v1467_v29, %v893_v34 }
 0x6ac   : > { %v898_v37 = vsel %vm897_vm13, %v1467_v29, %v894_v35 }
 0x6ad   : > { %v899_v38 = vmul.f32 %v898_v37, %v1968_v62 }
 0x6af   : > { %v903_v39 = vmul.f32 %v1445_v36, %v899_v38 }
 0x6b1   : > { %v904_v13 = vpack.c.bf16 %v903_v39, %v903_v39 }
 0x6b3   : > { %1286 = vmatmul.msk.bf16.vlgmr.msrb.gmra.mxu3 %vm408_vm0, %v904_v13  ;;  %1287 = vmatmul.msk.bf16.vlgmr.msra.gmra.mxu0 %vm408_vm0, %v904_v13 }
 0x730   : > { %v978_v46 = vpop.f32.mrf.mxu0 }
 0x736   : > { %v965_v49 = vpop.f32.mrf.mxu3 }
 0x737   : > { %v1288_v32 = vmul.f32 -1.442695, %v965_v49 }
 0x738   : > { %v980_v50 = vpop.f32.mrf.mxu0 }
 0x739   : > { %1468 = vpow2.f32 %v1288_v32 }
 0x73e   : > { %v967_v51 = vpop.f32.mrf.mxu3 }
 0x73f   : > { %v1469_v52 = vpop.eup %1468 }
 0x740   : > { %v985_v53 = vadd.f32 1.0, %v1469_v52 }
 0x742   : > { %1470 = vrcp.f32 %v985_v53  ;;  %v997_v58 = vand.u32 2147483648, %v985_v53  ;;  %v995_v60 = vand.u32 2147483647, %v985_v53  ;;  %vm991_vm15 = vweird.f32 %v985_v53 }
 0x744   : > { %v998_v63 = vor.u32 1.1754944e-38, %v997_v58  ;;  %vm996_vm2 = vcmp.eq.f32.partialorder %v995_v60, 8.507059e+37 }
 0x748   : > { %v1471_v54 = vpop.eup %1470 }
 0x749   : > { %v987_v55 = vmul.f32 %v1471_v54, %v985_v53  ;;  %vm992_vm14 = vweird.f32 %v1471_v54 }
 0x74a   : > { %vm993_vm1 = vmor %vm991_vm15, %vm992_vm14 }
 0x74b   : > { %v988_v56 = vsub.f32 1.0, %v987_v55 }
 0x74d   : > { %v989_v59 = vmul.f32 %v1471_v54, %v988_v56 }
 0x74f   : > { %v990_v61 = vadd.f32 %v1471_v54, %v989_v59 }
 0x751   : > { %v994_v57 = vsel %vm993_vm1, %v1471_v54, %v990_v61 }
 0x752   : > { %v999_v1 = vsel %vm996_vm2, %v998_v63, %v994_v57 }
 0x753   : > { %v1001_v2 = vmul.f32 %v999_v1, %v965_v49 }
 0x755   : > { %v1002_v3 = vmul.f32 %v1001_v2, %v978_v46 }
 0x757   : > { %v1003_v0 = vpack.c.bf16 %v1002_v3, %v1002_v3 }
 0x759   : > { %1076 = vmatmul.bf16.vlgmr.msra.gmra.mxu2 %v1003_v0 }
 0x7dc   : > { %v1077_v4 = vpop.f32.mrf.mxu2 }
 0x7dd   : > { %v1081_v5 = vadd.f32 %v1077_v4, %v1968_v62 }
 0x7df   : > { %1082 = vst.msk [vmem:[%s395_s1] sm:$0xff] %vm408_vm0, %v1081_v5 }
 0x7e0   : > { %1619 = shalt.err (!%p1616_p11)
}
 0x7e1   : > { %1363 = dma.vmem_to_hbm [thread:$0]  (%p1821_p3), %s1097_s4, 128, %s1099_s15, %s1084_s20  }
 0x7e4   : > { %v1079_v62 = vpop.f32.mrf.mxu2 }
 0x7e5 PF: > { %s1110_s14 = sand.u32 1, %s1654_s30   ;;  %p2111_p12 = scmp.ge.s32.totalorder %s1666_s12, 2 }
 0x7e6   : > { %s1111_s18 = scalar_lea.sflag [#allocation4], %s1110_s14 }
 0x7e7   : > { %p1380_p13 = pnand %p2111_p12, %p1774_p6 }
 0x7e9   : > { %p1381_p0 = pneg %p1380_p13 }
 0x7eb   : > { %1649 = dma.done.wait (%p1381_p0), %s1111_s18, 128  }
 0x7ec   : > { %1651 = vsyncadd (%p1381_p0), %s1111_s18, 4294967168  ;;  %p24_p5 = scmp.ge.s32.totalorder %s1808_s27, 4   ;;  %s2112_s30 = smov %s1658_s10 }
 0x7ed   : > { %s2113_s10 = smov %s1662_s11  ;;  %s2114_s11 = smov %s1817_s28 }
 0x7ee   : > { %s2115_s12 = smov %s1808_s27  ;;  %26 = sbr.rel (!%p24_p5) target bundleno = 11 (0xb), region = 113 }
 0x7f3   :  { %1117 = vsyncpa [#allocation3], 1 }
 0x7f4   :  { %1119 = vsyncpa [#allocation3 + $0x1], 1 }
 0x7f5   :  { %1120 = vsyncpa [#allocation6], 1 }
 0x7f6   :  { %1121 = vsyncpa [#allocation9], 1 }
 0x7f7   :  { %1122 = vsyncpa [#allocation4], 1 }
 0x7f8   :  { %1124 = vsyncpa [#allocation4 + $0x1], 1 }

</bundles_post_ra>
